<compile_context>
chip_gen: v5e
topology: v5e:2x2
jax: 0.10.0
libtpu: 0.0.40
codegen_flags: <defaults>
</compile_context>

<pallas_src>
import jax
import jax.numpy as jnp
from jax.experimental import pallas as pl
from jax.experimental.pallas import tpu as pltpu


def _round_up(x, m):
    return ((x + m - 1) // m) * m


def _cdiv(a, b):
    return -(-a // b)


def _device_kind():
    try:
        return jax.devices()[0].device_kind.lower()
    except Exception:
        return ""


def _is_v7x():
    return "v7" in _device_kind()


def _vmem_capacity_bytes():
    """Best-effort per-core VMEM capacity with a device-kind aware fallback."""
    try:
        info = pltpu.get_tpu_info()
        cap = getattr(info, "vmem_capacity_bytes", None)
        if cap:
            return int(cap)
    except Exception:
        pass
    # v7x has 64 MiB per TensorCore; v5e / v6e (and unknown) have 128 MiB.
    return (64 if _is_v7x() else 128) * 1024 * 1024


def _make_single_pass_kernel(tile_rows, tile_c, n_real_rows):
    """One class tile covers all of C exactly: direct logsumexp, no scratch."""

    def kernel(logits_ref, tgt_ref, out_ref):
        i = pl.program_id(0)

        logits = logits_ref[...].astype(jnp.float32)           # (TR, C)
        tgt = tgt_ref[...]                                      # (TR, 1) int32

        col = jax.lax.broadcasted_iota(jnp.int32, (1, tile_c), 1)   # (1, C)

        m = jnp.max(logits, axis=-1, keepdims=True)             # (TR, 1)
        s = jnp.sum(jnp.exp(logits - m), axis=-1, keepdims=True)
        lse = m + jnp.log(s)
        # target-class logit via masked select (no float one-hot multiply)
        t = jnp.sum(jnp.where(col == tgt, logits, 0.0),
                    axis=-1, keepdims=True)

        per_row = lse - t                                       # (TR, 1)
        # rows beyond the real R (last, partial row tile) are OOB garbage
        row = i * tile_rows + jax.lax.broadcasted_iota(
            jnp.int32, (tile_rows, 1), 0)
        per_row = jnp.where(row < n_real_rows, per_row, 0.0)

        # lane-dense (1, 8, 128) write of this tile's partial sum
        out_ref[...] = jnp.zeros_like(out_ref) + jnp.sum(per_row)

    return kernel


def _make_online_kernel(tile_rows, tile_c, n_real_rows, n_real_cols, mask_cols):
    """Online logsumexp over class tiles (large-vocab path)."""

    def kernel(logits_ref, tgt_ref, out_ref, m_ref, s_ref, t_ref):
        i = pl.program_id(0)            # row-tile index   (parallel)
        k = pl.program_id(1)            # class-tile index (arbitrary, last)
        nk = pl.num_programs(1)

        @pl.when(k == 0)
        def _():
            m_ref[...] = jnp.full_like(m_ref, -jnp.inf)   # running max
            s_ref[...] = jnp.zeros_like(s_ref)            # running sum(exp)
            t_ref[...] = jnp.zeros_like(t_ref)            # target logit

        logits = logits_ref[...].astype(jnp.float32)      # (TR, TC)
        col = jax.lax.broadcasted_iota(jnp.int32, (1, tile_c), 1)   # (1, TC)

        if mask_cols:
            # columns past the real vocab (only the last class tile) hold OOB
            # garbage -- replace with -inf via a (1, TC) broadcast mask
            col_valid = (k * tile_c + col) < n_real_cols  # (1, TC) bool
            logits = jnp.where(col_valid, logits, -jnp.inf)

        # target-class logit contribution from this class tile
        tgt_local = tgt_ref[...] - k * tile_c             # (TR, 1)
        t_ref[...] += jnp.sum(jnp.where(col == tgt_local, logits, 0.0),
                              axis=-1, keepdims=True)

        # online logsumexp over the class (lane) axis
        m_prev = m_ref[...]
        m_new = jnp.maximum(m_prev, jnp.max(logits, axis=-1, keepdims=True))
        s_ref[...] = (s_ref[...] * jnp.exp(m_prev - m_new)
                      + jnp.sum(jnp.exp(logits - m_new), axis=-1, keepdims=True))
        m_ref[...] = m_new

        @pl.when(k == nk - 1)
        def _():
            lse = m_ref[...] + jnp.log(s_ref[...])        # (TR, 1)
            per_row = lse - t_ref[...]                    # (TR, 1)
            row = i * tile_rows + jax.lax.broadcasted_iota(
                jnp.int32, (tile_rows, 1), 0)
            per_row = jnp.where(row < n_real_rows, per_row, 0.0)
            out_ref[...] = jnp.zeros_like(out_ref) + jnp.sum(per_row)

    return kernel


def hierarchical_xentropy_loss(outputs, targets, weight_word_loss=1.0,
                               *, _max_tile_rows=None, _max_tile_c=None):
    """outputs: (S, N, C) float logits; targets: (S, N) int labels.

    Returns a shape-(1,) float32 array, matching the PyTorch module's output.
    `_max_tile_rows` / `_max_tile_c` are test-only knobs to force the
    multi-row-tile and online-logsumexp (multi-class-tile) paths at small
    shapes.
    """
    S, N, C = outputs.shape
    R = S * N
    logit_bytes = jnp.dtype(outputs.dtype).itemsize

    is_v7 = _is_v7x()
    vmem_cap = _vmem_capacity_bytes()

    # --- class (lane) tiling: single exact tile for modest C, wide tiles else
    MAX_SINGLE_TILE_C = 4096
    if _max_tile_c is not None:
        tile_c = max(128, min((_max_tile_c // 128) * 128, _round_up(C, 128)))
        force_online = True
    elif C <= MAX_SINGLE_TILE_C:
        tile_c = C
        force_online = False
    else:
        # v5e/v6e (128 MiB VMEM) can afford 4096-wide class tiles; v7x cannot.
        tile_c = 2048 if is_v7 else 4096
        force_online = True
    num_c_tiles = _cdiv(C, tile_c)
    mask_cols = num_c_tiles * tile_c != C
    single_pass = (not force_online) and num_c_tiles == 1

    # --- row (sublane) tiling sized to the REAL VMEM footprint:
    #     double-buffered input tile + in-kernel f32 copy / exp / select temps
    budget = int(vmem_cap * 0.45)
    per_row_bytes = (2 * logit_bytes + 4 * 4) * tile_c
    rows_fit = max(8, (budget // per_row_bytes) // 8 * 8)
    tile_rows = min(_round_up(R, 8), rows_fit, 2048)
    if _max_tile_rows is not None:
        tile_rows = min(tile_rows, max(8, (_max_tile_rows // 8) * 8))
    tile_rows = max(8, tile_rows)
    # v7x: the 'parallel' row axis feeds both TensorCores -- never one tile.
    if is_v7 and R >= 16 and _cdiv(R, tile_rows) < 2:
        tile_rows = max(8, _round_up(_cdiv(R, 2), 8))
    num_row_tiles = _cdiv(R, tile_rows)

    vmem_limit = min(vmem_cap,
                     max(int(tile_rows * per_row_bytes * 1.5), 32 * 1024 * 1024))

    # --- flatten (no padding: partial edge tiles are masked in-kernel) ---
    logits2 = outputs.reshape(R, C)
    tgt2 = targets.reshape(R, 1).astype(jnp.int32)

    cost = pl.CostEstimate(
        flops=6 * R * C,
        transcendentals=R * C,
        bytes_accessed=R * C * logit_bytes + R * 4
        + num_row_tiles * 8 * 128 * 4,
    )

    if single_pass:
        kernel = _make_single_pass_kernel(tile_rows, tile_c, R)
        grid = (num_row_tiles,)
        in_specs = [
            pl.BlockSpec((tile_rows, tile_c), lambda i: (i, 0)),
            pl.BlockSpec((tile_rows, 1), lambda i: (i, 0)),
        ]
        out_specs = pl.BlockSpec((1, 8, 128), lambda i: (i, 0, 0))
        scratch = []
        dims = ("parallel",)
    else:
        kernel = _make_online_kernel(tile_rows, tile_c, R, C, mask_cols)
        grid = (num_row_tiles, num_c_tiles)
        in_specs = [
            pl.BlockSpec((tile_rows, tile_c), lambda i, k: (i, k)),
            pl.BlockSpec((tile_rows, 1), lambda i, k: (i, 0)),
        ]
        out_specs = pl.BlockSpec((1, 8, 128), lambda i, k: (i, 0, 0))
        scratch = [pltpu.VMEM((tile_rows, 1), jnp.float32)] * 3
        dims = ("parallel", "arbitrary")

    partials = pl.pallas_call(
        kernel,
        out_shape=jax.ShapeDtypeStruct((num_row_tiles, 8, 128), jnp.float32),
        grid_spec=pltpu.PrefetchScalarGridSpec(
            num_scalar_prefetch=0,
            grid=grid,
            in_specs=in_specs,
            out_specs=out_specs,
            scratch_shapes=scratch,
        ),
        compiler_params=pltpu.CompilerParams(
            dimension_semantics=dims,
            vmem_limit_bytes=vmem_limit,
        ),
        cost_estimate=cost,
    )(logits2, tgt2)

    total = jnp.sum(partials[:, 0, 0])
    loss = jnp.float32(weight_word_loss) * total / jnp.float32(N)
    return loss.reshape(1)


def _reference(outputs, targets, weight_word_loss=1.0):
    # pure-JAX reference of weight * sum_j mean-cross-entropy
    logits = outputs.astype(jnp.float32)
    logz = jax.scipy.special.logsumexp(logits, axis=-1)                   # (S, N)
    tgt_logit = jnp.take_along_axis(
        logits, targets[..., None].astype(jnp.int32), axis=-1)[..., 0]    # (S, N)
    per_sentence = jnp.mean(logz - tgt_logit, axis=-1)                    # (S,)
    return jnp.asarray([weight_word_loss], jnp.float32) * jnp.sum(per_sentence)


if __name__ == "__main__":
    key = jax.random.PRNGKey(0)
    k1, k2, k3, k4, k5, k6 = jax.random.split(key, 6)

    # Case 1: common path -- single class tile, exact tiling.
    S, N, C = 4, 16, 128
    outputs = jax.random.normal(k1, (S, N, C), dtype=jnp.float32)
    targets = jax.random.randint(k2, (S, N), 0, C, dtype=jnp.int32)
    loss = hierarchical_xentropy_loss(outputs, targets, weight_word_loss=1.0)
    jax.block_until_ready(loss)
    ref = _reference(outputs, targets, weight_word_loss=1.0)
    assert loss.shape == (1,)
    assert jnp.allclose(loss, ref, rtol=1e-5, atol=1e-5), (loss, ref)

    # Case 2: multiple row tiles, R not tile-aligned, C not 128-aligned
    # (exercises the in-kernel row mask; no wrapper-side padding anywhere).
    S2, N2, C2 = 3, 10, 96
    outputs2 = jax.random.normal(k3, (S2, N2, C2), dtype=jnp.float32)
    targets2 = jax.random.randint(k4, (S2, N2), 0, C2, dtype=jnp.int32)
    loss2 = hierarchical_xentropy_loss(outputs2, targets2, weight_word_loss=0.5,
                                       _max_tile_rows=16)
    jax.block_until_ready(loss2)
    ref2 = _reference(outputs2, targets2, weight_word_loss=0.5)
    assert loss2.shape == (1,)
    assert jnp.allclose(loss2, ref2, rtol=1e-5, atol=1e-5), (loss2, ref2)

    # Case 3: force the online-logsumexp multi-class-tile (large-vocab) path
    # at a small shape, with a partial last class tile (column mask).
    S3, N3, C3 = 2, 8, 300
    outputs3 = jax.random.normal(k5, (S3, N3, C3), dtype=jnp.float32)
    targets3 = jax.random.randint(k6, (S3, N3), 0, C3, dtype=jnp.int32)
    loss3 = hierarchical_xentropy_loss(outputs3, targets3, weight_word_loss=2.0,
                                       _max_tile_rows=8, _max_tile_c=128)
    jax.block_until_ready(loss3)
    ref3 = _reference(outputs3, targets3, weight_word_loss=2.0)
    assert loss3.shape == (1,)
    assert jnp.allclose(loss3, ref3, rtol=1e-5, atol=1e-5), (loss3, ref3)

    print("KERNEL_OK")
</pallas_src>

<mosaic_0001>
module attributes {stable_mosaic.version = 11 : i64} {
  func.func @kernel(%arg0: i32, %arg1: memref<64x128xf32, #tpu.memory_space<vmem>>, %arg2: memref<64x1xi32, #tpu.memory_space<vmem>>, %arg3: memref<1x8x128xf32, #tpu.memory_space<vmem>>) attributes {dimension_semantics = [#tpu.dimension_semantics<parallel>], iteration_bounds = array<i64: 1>, scalar_prefetch = 0 : i64, scratch_operands = 0 : i64, tpu.core_type = #tpu.core_type<tc>, window_params = [{transform_indices = @transform_0, window_bounds = array<i64: 64, 128>}, {transform_indices = @transform_1, window_bounds = array<i64: 64, 1>}, {transform_indices = @transform_2, window_bounds = array<i64: 1, 8, 128>}]} {
    %c0 = arith.constant 0 : index
    %c0_0 = arith.constant 0 : index
    %0 = vector.load %arg1[%c0, %c0_0] : memref<64x128xf32, #tpu.memory_space<vmem>>, vector<64x128xf32>
    %c0_1 = arith.constant 0 : index
    %c0_2 = arith.constant 0 : index
    %1 = vector.load %arg2[%c0_1, %c0_2] : memref<64x1xi32, #tpu.memory_space<vmem>>, vector<64x1xi32>
    %2 = tpu.iota {dimensions = array<i32: 1>} : vector<1x128xi32>
    %cst = arith.constant dense<0xFF800000> : vector<64xf32>
    %3 = vector.multi_reduction <maximumf>, %0, %cst [1] : vector<64x128xf32> to vector<64xf32>
    %4 = vector.shape_cast %3 : vector<64xf32> to vector<64x1xf32>
    %5 = vector.broadcast %4 : vector<64x1xf32> to vector<64x128xf32>
    %6 = arith.subf %0, %5 : vector<64x128xf32>
    %7 = math.exp %6 : vector<64x128xf32>
    %cst_3 = arith.constant dense<0.000000e+00> : vector<64xf32>
    %8 = vector.multi_reduction <add>, %7, %cst_3 [1] : vector<64x128xf32> to vector<64xf32>
    %9 = vector.shape_cast %8 : vector<64xf32> to vector<64x1xf32>
    %10 = math.log %9 : vector<64x1xf32>
    %11 = arith.addf %4, %10 : vector<64x1xf32>
    %12 = vector.broadcast %2 : vector<1x128xi32> to vector<64x128xi32>
    %13 = vector.broadcast %1 : vector<64x1xi32> to vector<64x128xi32>
    %14 = arith.cmpi eq, %12, %13 : vector<64x128xi32>
    %cst_4 = arith.constant 0.000000e+00 : f32
    %15 = vector.broadcast %cst_4 : f32 to vector<64x128xf32>
    %16 = arith.select %14, %0, %15 : vector<64x128xi1>, vector<64x128xf32>
    %cst_5 = arith.constant dense<0.000000e+00> : vector<64xf32>
    %17 = vector.multi_reduction <add>, %16, %cst_5 [1] : vector<64x128xf32> to vector<64xf32>
    %18 = vector.shape_cast %17 : vector<64xf32> to vector<64x1xf32>
    %19 = arith.subf %11, %18 : vector<64x1xf32>
    %c64_i32 = arith.constant 64 : i32
    %20 = arith.muli %arg0, %c64_i32 : i32
    %21 = tpu.iota {dimensions = array<i32: 0>} : vector<64x1xi32>
    %22 = vector.broadcast %20 : i32 to vector<64x1xi32>
    %23 = arith.addi %22, %21 : vector<64x1xi32>
    %c64_i32_6 = arith.constant 64 : i32
    %24 = vector.broadcast %c64_i32_6 : i32 to vector<64x1xi32>
    %25 = arith.cmpi slt, %23, %24 : vector<64x1xi32>
    %cst_7 = arith.constant 0.000000e+00 : f32
    %26 = vector.broadcast %cst_7 : f32 to vector<64x1xf32>
    %27 = arith.select %25, %19, %26 : vector<64x1xi1>, vector<64x1xf32>
    %cst_8 = arith.constant 0.000000e+00 : f32
    %28 = vector.broadcast %cst_8 : f32 to vector<1x8x128xf32>
    %29 = vector.shape_cast %27 : vector<64x1xf32> to vector<1x64x1xf32>
    %cst_9 = arith.constant dense<0.000000e+00> : vector<1xf32>
    %30 = vector.multi_reduction <add>, %29, %cst_9 [1, 2] : vector<1x64x1xf32> to vector<1xf32>
    %31 = vector.shape_cast %30 : vector<1xf32> to vector<1x1x1xf32>
    %32 = vector.extract %31[0, 0, 0] : f32 from vector<1x1x1xf32>
    %33 = vector.broadcast %32 : f32 to vector<1x8x128xf32>
    %34 = arith.addf %28, %33 : vector<1x8x128xf32>
    %c0_10 = arith.constant 0 : index
    %c0_11 = arith.constant 0 : index
    %c0_12 = arith.constant 0 : index
    %35 = vector.load %arg3[%c0_10, %c0_11, %c0_12] : memref<1x8x128xf32, #tpu.memory_space<vmem>>, vector<1x8x128xf32>
    tpu.vector_store %arg3[%c0_10, %c0_11, %c0_12], %34 {strides = array<i32>} : memref<1x8x128xf32, #tpu.memory_space<vmem>>, vector<1x8x128xf32>,
    return
  }
  func.func @transform_0(%arg0: i32) -> (i32, i32) {
    %c0_i32 = arith.constant 0 : i32
    %c0_i32_0 = arith.constant 0 : i32
    return %arg0, %c0_i32 : i32, i32
  }
  func.func @transform_1(%arg0: i32) -> (i32, i32) {
    %c0_i32 = arith.constant 0 : i32
    %c0_i32_0 = arith.constant 0 : i32
    return %arg0, %c0_i32 : i32, i32
  }
  func.func @transform_2(%arg0: i32) -> (i32, i32, i32) {
    %c0_i32 = arith.constant 0 : i32
    %c0_i32_0 = arith.constant 0 : i32
    %c0_i32_1 = arith.constant 0 : i32
    return %arg0, %c0_i32, %c0_i32_0 : i32, i32, i32
  }
}

</mosaic_0001>

<bundles_post_ra>
// kernel: tpu_custom_call.1
= control target key start
LH: loop header
LB: loop body
LE: loop exit
PB: predicated region body
PF: predicated region fallthrough
CT: control target
= control target key end

     0   :  { %v318_v3 = vmov 0   ;;  %s471_s0 = inlined_call_operand.vmem [shape: f32[64,128], index: 0, kind: input, shape index: {}]   ;;  %s472_s1 = inlined_call_operand.vmem [shape: s32[64,1], index: 1, kind: input, shape index: {}]   ;;  %s473_s2 = inlined_call_operand.hbm [shape: f32[1,8,128], index: 2, kind: output, shape index: {}]  }
   0x1   :  { %v338_v0 = vld [vmem:[%s471_s0 + $0x20] sm:$0xff]  ;;  %v343_v1 = vld [vmem:[%s471_s0 + $0x10] sm:$0xff]  ;;  %257 = vset.pattern.permute.xlu2 %v318_v3  ;;  %258 = vset.pattern.permute.xlu0 %v318_v3 }
   0x2   :  { %v12_v2 = vld [vmem:[%s471_s0] sm:$0xff]  ;;  %38 = vmax.xlane.f32.xlu2 %v338_v0  ;;  %34 = vmax.xlane.f32.xlu1 %v343_v1 }
   0x3   :  { %30 = vmax.xlane.f32.xlu0 %v12_v2  ;;  %259 = vset.pattern.permute.xlu1 %v318_v3 }
   0x4   :  { %7 = vsyncpa [#allocation3], 0  ;;  %v353_v4 = vld [vmem:[%s471_s0 + $0x28] sm:$0xff]  ;;  %v358_v5 = vld [vmem:[%s471_s0 + $0x18] sm:$0xff]  ;;  %v28_v22 = vlaneseq  ;;  %vm209_vm8 = vcmask 7168   ;;  %s244_s15 = sshll.u32 %s473_s2, 4  ;;  %s245_s15 = int_to_ptr.hbm [resolvable:$true] %s244_s15 }
   0x5   :  { %v363_v6 = vld [vmem:[%s471_s0 + $0x8] sm:$0xff]  ;;  %v371_v7 = vld [vmem:[%s471_s0 + $0x38] sm:$0xff]  ;;  %v376_v8 = vld [vmem:[%s471_s0 + $0x30] sm:$0xff] }
   0x6   :  { %v20_v9 = vld [vmem:[%s472_s1] sm:$0xff]  ;;  %v21_v10 = vld [vmem:[%s472_s1 + $0x8] sm:$0xff]  ;;  %v23_v11 = vld [vmem:[%s472_s1 + $0x18] sm:$0xff]  ;;  %v421_v28 = vand.u32 127, %v28_v22 }
   0x7   :  { %v22_v12 = vld [vmem:[%s472_s1 + $0x10] sm:$0xff]  ;;  %v24_v13 = vld [vmem:[%s472_s1 + $0x20] sm:$0xff]  ;;  %v25_v14 = vld [vmem:[%s472_s1 + $0x28] sm:$0xff] }
   0x8   :  { %v26_v15 = vld [vmem:[%s472_s1 + $0x30] sm:$0xff]  ;;  %v27_v16 = vld [vmem:[%s472_s1 + $0x38] sm:$0xff]  ;;  %s319_s1 = smov [#allocation2]  }
   0x9   :  { %s242_s12 = sshll.u32 %s319_s1, 4  ;;  %s243_s12 = int_to_ptr.vmem [resolvable:$true] %s242_s12 }
   0xa   :  { %40 = vmax.xlane.f32.xlu2 %v353_v4  ;;  %36 = vmax.xlane.f32.xlu1 %v358_v5 }
   0xb   :  { %32 = vmax.xlane.f32.xlu0 %v363_v6 }
  0x12   :  { %44 = vmax.xlane.f32.xlu1 %v371_v7 }
  0x13   :  { %42 = vmax.xlane.f32.xlu0 %v376_v8 }
  0x22   :  { %111 = vperm.xlu2 %257, %v20_v9  }
  0x27   :  { %114 = vperm.xlu0 %258, %v21_v10  }
  0x2a   :  { %120 = vperm.xlu2 %257, %v23_v11  }
  0x2b   :  { %117 = vperm.xlu1 %259, %v22_v12  }
  0x32   :  { %123 = vperm.xlu2 %257, %v24_v13  }
  0x33   :  { %126 = vperm.xlu1 %259, %v25_v14  }
  0x3a   :  { %129 = vperm.xlu2 %257, %v26_v15  }
  0x3b   :  { %132 = vperm.xlu1 %259, %v27_v16  }
  0x75   :  { %v404_v17 = vpop.xlane.xlu2 %38  ;;  %v406_v18 = vpop.xlane.xlu1 %34 }
  0x76   :  { %v408_v19 = vpop.xlane.xlu0 %30  ;;  %v50_v35 = vsub.f32 %v338_v0, %v404_v17  ;;  %v48_v43 = vsub.f32 %v343_v1, %v406_v18 }
  0x77   :  { %v46_v25 = vsub.f32 %v12_v2, %v408_v19 }
  0x78   :  { %v62_v37 = vmul.f32 1.442695, %v50_v35  ;;  %v58_v47 = vmul.f32 1.442695, %v48_v43 }
  0x79   :  { %v54_v29 = vmul.f32 1.442695, %v46_v25 }
  0x7d   :  { %v410_v20 = vpop.xlane.xlu2 %40  ;;  %v414_v23 = vpop.xlane.xlu1 %36 }
  0x7e   :  { %v412_v21 = vpop.xlane.xlu0 %32  ;;  %v49_v27 = vsub.f32 %v358_v5, %v414_v23  ;;  %v51_v51 = vsub.f32 %v353_v4, %v410_v20 }
  0x7f   :  { %v47_v24 = vsub.f32 %v363_v6, %v412_v21 }
  0x80   :  { %v60_v31 = vmul.f32 1.442695, %v49_v27  ;;  %v64_v55 = vmul.f32 1.442695, %v51_v51 }
  0x81   :  { %v56_v26 = vmul.f32 1.442695, %v47_v24 }
  0x83   :  { %260 = vpow2.f32 %v56_v26 }
  0x84   :  { %262 = vpow2.f32 %v54_v29 }
  0x85   :  { %v112_v30 = vpop.permute.xlu2 %111  ;;  %264 = vpow2.f32 %v60_v31  ;;  %v430_v41 = vpop.xlane.xlu1 %44 }
  0x86   :  { %vm134_vm0 = vcmp.eq.s32.totalorder %v421_v28, %v112_v30  ;;  %v424_v33 = vpop.xlane.xlu0 %42  ;;  %266 = vpow2.f32 %v62_v37  ;;  %v53_v42 = vsub.f32 %v371_v7, %v430_v41 }
  0x87   :  { %v142_v32 = vsel %vm134_vm0, %v12_v2, 0.0  ;;  %v52_v36 = vsub.f32 %v376_v8, %v424_v33 }
  0x88   :  { %150 = vadd.xlane.f32.xlu0 %v142_v32  ;;  %v68_v45 = vmul.f32 1.442695, %v53_v42 }
  0x89   :  { %v261_v34 = vpop.eup %260  ;;  %v66_v40 = vmul.f32 1.442695, %v52_v36 }
  0x8a   :  { %72 = vadd.xlane.f32.xlu2 %v261_v34  ;;  %v263_v38 = vpop.eup %262 }
  0x8b   :  { %v265_v39 = vpop.eup %264  ;;  %268 = vpow2.f32 %v66_v40 }
  0x8c   :  { %v267_v44 = vpop.eup %266  ;;  %270 = vpow2.f32 %v68_v45 }
  0x8d   :  { %v121_v48 = vpop.permute.xlu2 %120  ;;  %272 = vpow2.f32 %v58_v47 }
  0x8e   :  { %274 = vpow2.f32 %v64_v55  ;;  %vm137_vm6 = vcmp.eq.s32.totalorder %v421_v28, %v121_v48 }
  0x90   :  { %70 = vadd.xlane.f32.xlu0 %v263_v38 }
  0x91   :  { %v269_v46 = vpop.eup %268 }
  0x92   :  { %76 = vadd.xlane.f32.xlu2 %v265_v39  ;;  %v271_v54 = vpop.eup %270 }
  0x93   :  { %v273_v56 = vpop.eup %272 }
  0x94   :  { %v275_v61 = vpop.eup %274 }
  0x95   :  { %v124_v57 = vpop.permute.xlu2 %123 }
  0x96   :  { %vm138_vm3 = vcmp.eq.s32.totalorder %v421_v28, %v124_v57 }
  0x97   :  { %v146_v60 = vsel %vm138_vm3, %v338_v0, 0.0 }
  0x98   :  { %78 = vadd.xlane.f32.xlu0 %v267_v44 }
  0x99   :  { %v115_v49 = vpop.permute.xlu0 %114 }
  0x9a   :  { %vm135_vm1 = vcmp.eq.s32.totalorder %v421_v28, %v115_v49  ;;  %82 = vadd.xlane.f32.xlu2 %v269_v46 }
  0x9b   :  { %v143_v50 = vsel %vm135_vm1, %v363_v6, 0.0 }
  0x9c   :  { %152 = vadd.xlane.f32.xlu1 %v143_v50 }
  0x9d   :  { %v118_v52 = vpop.permute.xlu1 %117  ;;  %v130_v2 = vpop.permute.xlu2 %129 }
  0x9e   :  { %vm136_vm2 = vcmp.eq.s32.totalorder %v421_v28, %v118_v52  ;;  %vm140_vm7 = vcmp.eq.s32.totalorder %v421_v28, %v130_v2 }
  0x9f   :  { %v144_v53 = vsel %vm136_vm2, %v343_v1, 0.0  ;;  %v145_v1 = vsel %vm137_vm6, %v358_v5, 0.0  ;;  %v148_v3 = vsel %vm140_vm7, %v376_v8, 0.0 }
  0xa0   :  { %154 = vadd.xlane.f32.xlu0 %v144_v53 }
  0xa2   :  { %84 = vadd.xlane.f32.xlu2 %v271_v54 }
  0xa4   :  { %74 = vadd.xlane.f32.xlu1 %v273_v56 }
  0xa5   :  { %v127_v58 = vpop.permute.xlu1 %126 }
  0xa6   :  { %vm139_vm4 = vcmp.eq.s32.totalorder %v421_v28, %v127_v58 }
  0xa7   :  { %v147_v59 = vsel %vm139_vm4, %v353_v4, 0.0 }
  0xa8   :  { %160 = vadd.xlane.f32.xlu0 %v147_v59 }
  0xaa   :  { %158 = vadd.xlane.f32.xlu2 %v146_v60 }
  0xac   :  { %80 = vadd.xlane.f32.xlu1 %v275_v61 }
  0xad   :  { %v133_v62 = vpop.permute.xlu1 %132 }
  0xae   :  { %vm141_vm5 = vcmp.eq.s32.totalorder %v421_v28, %v133_v62 }
  0xaf   :  { %v149_v63 = vsel %vm141_vm5, %v371_v7, 0.0 }
  0xb2   :  { %164 = vadd.xlane.f32.xlu2 %v149_v63 }
  0xb4   :  { %156 = vadd.xlane.f32.xlu1 %v145_v1 }
  0xbc   :  { %162 = vadd.xlane.f32.xlu1 %v148_v3 }
  0xfb   :  { %v151_v4 = vpop.xlane.xlu0 %150 }
  0xfd   :  { %v73_v0 = vpop.xlane.xlu2 %72 }
 0x103   :  { %v71_v9 = vpop.xlane.xlu0 %70 }
 0x104   :  { %276 = vlog2.f32 %v71_v9 }
 0x105   :  { %v77_v6 = vpop.xlane.xlu2 %76  ;;  %278 = vlog2.f32 %v73_v0 }
 0x106   :  { %280 = vlog2.f32 %v77_v6 }
 0x10a   :  { %v277_v7 = vpop.eup %276 }
 0x10b   :  { %v79_v12 = vpop.xlane.xlu0 %78  ;;  %v279_v13 = vpop.eup %278  ;;  %v87_v14 = vmul.f32 0.6931472, %v277_v7 }
 0x10c   :  { %v89_v16 = vmul.f32 0.6931472, %v279_v13  ;;  %v281_v22 = vpop.eup %280 }
 0x10d   :  { %v83_v10 = vpop.xlane.xlu2 %82  ;;  %v102_v8 = vadd.f32 %v87_v14, %v408_v19  ;;  %v93_v34 = vmul.f32 0.6931472, %v281_v22 }
 0x10e   :  { %v103_v25 = vadd.f32 %v89_v16, %v412_v21 }
 0x10f   :  { %v153_v11 = vpop.xlane.xlu1 %152  ;;  %v166_v29 = vsub.f32 %v102_v8, %v151_v4  ;;  %v105_v43 = vadd.f32 %v93_v34, %v414_v23 }
 0x110   :  { %v167_v30 = vsub.f32 %v103_v25, %v153_v11 }
 0x111   :  { %v210_v37 = vsel %vm209_vm8, %v166_v29, 0.0 }
 0x112   :  { %v211_v21 = vsel %vm209_vm8, %v167_v30, 0.0 }
 0x113   :  { %v155_v31 = vpop.xlane.xlu0 %154  ;;  %v212_v45 = vadd.f32 %v211_v21, %v210_v37 }
 0x115   :  { %v85_v15 = vpop.xlane.xlu2 %84 }
 0x117   :  { %v75_v5 = vpop.xlane.xlu1 %74 }
 0x118   :  { %282 = vlog2.f32 %v75_v5 }
 0x119   :  { %284 = vlog2.f32 %v79_v12 }
 0x11a   :  { %286 = vlog2.f32 %v83_v10 }
 0x11b   :  { %v161_v53 = vpop.xlane.xlu0 %160 }
 0x11d   :  { %v159_v19 = vpop.xlane.xlu2 %158 }
 0x11e   :  { %v283_v24 = vpop.eup %282 }
 0x11f   :  { %v285_v26 = vpop.eup %284  ;;  %v91_v27 = vmul.f32 0.6931472, %v283_v24  ;;  %v81_v28 = vpop.xlane.xlu1 %80 }
 0x120   :  { %288 = vlog2.f32 %v81_v28  ;;  %v95_v35 = vmul.f32 0.6931472, %v285_v26  ;;  %v287_v38 = vpop.eup %286 }
 0x121   :  { %290 = vlog2.f32 %v85_v15  ;;  %v104_v32 = vadd.f32 %v91_v27, %v406_v18  ;;  %v99_v51 = vmul.f32 0.6931472, %v287_v38 }
 0x122   :  { %v106_v42 = vadd.f32 %v95_v35, %v404_v17 }
 0x123   :  { %v168_v36 = vsub.f32 %v104_v32, %v155_v31  ;;  %v108_v60 = vadd.f32 %v99_v51, %v424_v33 }
 0x124   :  { %v170_v47 = vsub.f32 %v106_v42, %v159_v19 }
 0x125   :  { %v213_v40 = vsel %vm209_vm8, %v168_v36, 0.0  ;;  %v165_v57 = vpop.xlane.xlu2 %164 }
 0x126   :  { %v289_v39 = vpop.eup %288  ;;  %v214_v49 = vadd.f32 %v213_v40, %v212_v45  ;;  %v217_v17 = vsel %vm209_vm8, %v170_v47, 0.0 }
 0x127   :  { %v291_v44 = vpop.eup %290  ;;  %v97_v46 = vmul.f32 0.6931472, %v289_v39  ;;  %v157_v18 = vpop.xlane.xlu1 %156 }
 0x128   :  { %v169_v48 = vsub.f32 %v105_v43, %v157_v18  ;;  %v101_v52 = vmul.f32 0.6931472, %v291_v44 }
 0x129   :  { %v107_v50 = vadd.f32 %v97_v46, %v410_v20 }
 0x12a   :  { %v215_v54 = vsel %vm209_vm8, %v169_v48, 0.0  ;;  %v109_v59 = vadd.f32 %v101_v52, %v430_v41 }
 0x12b   :  { %v171_v55 = vsub.f32 %v107_v50, %v161_v53  ;;  %v216_v56 = vadd.f32 %v215_v54, %v214_v49 }
 0x12c   :  { %v173_v62 = vsub.f32 %v109_v59, %v165_v57 }
 0x12d   :  { %v218_v23 = vadd.f32 %v217_v17, %v216_v56  ;;  %v219_v58 = vsel %vm209_vm8, %v171_v55, 0.0 }
 0x12e   :  { %v223_v3 = vsel %vm209_vm8, %v173_v62, 0.0 }
 0x12f   :  { %v163_v61 = vpop.xlane.xlu1 %162  ;;  %v220_v63 = vadd.f32 %v219_v58, %v218_v23 }
 0x130   :  { %v172_v20 = vsub.f32 %v108_v60, %v163_v61 }
 0x132   :  { %v221_v1 = vsel %vm209_vm8, %v172_v20, 0.0 }
 0x133   :  { %v222_v2 = vadd.f32 %v221_v1, %v220_v63 }
 0x135   :  { %v224_v0 = vadd.f32 %v223_v3, %v222_v2 }
 0x137   :  { %225 = vadd.xlane.f32.xlu0 %v224_v0 }
 0x1aa   :  { %v226_v4 = vpop.xlane.xlu0 %225 }
 0x1ab   :  { %v227_v6 = vrot.slane %v226_v4, 4 }
 0x1ad   :  { %v228_v9 = vadd.f32 %v227_v6, %v226_v4 }
 0x1af   :  { %v229_v10 = vrot.slane %v228_v9, 2 }
 0x1b1   :  { %v230_v11 = vadd.f32 %v229_v10, %v228_v9 }
 0x1b3   :  { %v231_v7 = vrot.slane %v230_v11, 1 }
 0x1b5   :  { %v232_v41 = vadd.f32 %v231_v7, %v230_v11 }
 0x1b7   :  { %253 = vpush %v232_v41 }
 0x1e8   :  { %s254_s16 = spop %253 }
 0x1e9   :  { %v234_v33 = vstv %s254_s16 }
 0x1ea   :  { %236 = vst [vmem:[#allocation2] sm:$0xff] %v234_v33 }
 0x1eb   :  { %247 = dma.vmem_to_hbm [thread:$0]  %s243_s12, 128, %s245_s15, [#allocation3]  }
 0x1ec   :  { %316 = dma.done.wait [#allocation3], 128  }
 0x1ed   :  { %317 = vsyncadd [#allocation3], 4294967168 }
 0x1ee   :  { %252 = vsyncpa [#allocation3], 1 }

</bundles_post_ra>
